<compile_context>
chip_gen: v6e
topology: v6e:2x2x1
jax: 0.10.0
libtpu: 0.0.40
codegen_flags: <defaults>
</compile_context>

<pallas_src>
import functools

import jax
import jax.numpy as jnp
from jax.experimental import pallas as pl
from jax.experimental.pallas import tpu as pltpu

LANE = 128     # TPU vreg lane width
SUBLANE = 8    # TPU vreg sublane count (f32)


def _ceil_to(x, m):
    return ((x + m - 1) // m) * m


# ----------------------------------------------------------------------------
# Kernel: whole 4-layer MLP for one batch tile, everything resident in VMEM.
# ----------------------------------------------------------------------------
def mlp_kernel(x_ref, w1_ref, w_ref, b_ref, o_ref):
    """x_ref : (in_dim, tb)            compute dtype  -- x^T tile
    w1_ref: (n_hidden, in_dim)         compute dtype  -- fc1 weight
    w_ref : (3, n_hidden, n_hidden)    compute dtype  -- fc2, fc3, fc4 (fc4 rows zero-padded)
    b_ref : (4, n_hidden, 1)           float32        -- b1..b4 (b4 zero-padded)
    o_ref : (out_rows, tb)             float32        -- out^T tile (rows >= n_jnts are zero)
    """
    cd = w1_ref.dtype

    # fc1 + ReLU   (K=6: MXU fill is low, but compute is not the bottleneck here)
    h = jnp.dot(w1_ref[...], x_ref[...],
                preferred_element_type=jnp.float32) + b_ref[0]
    h = jnp.maximum(h, 0.0)

    # fc2 + ReLU
    h = jnp.dot(w_ref[0], h.astype(cd),
                preferred_element_type=jnp.float32) + b_ref[1]
    h = jnp.maximum(h, 0.0)

    # fc3 + ReLU
    h = jnp.dot(w_ref[1], h.astype(cd),
                preferred_element_type=jnp.float32) + b_ref[2]
    h = jnp.maximum(h, 0.0)

    # fc4 (weight rows >= n_jnts are zero, so extra output rows are zero)
    out = jnp.dot(w_ref[2], h.astype(cd),
                  preferred_element_type=jnp.float32) + b_ref[3]

    # Store only the sublane-aligned leading rows (out_rows <= n_hidden).
    o_ref[...] = out[:o_ref.shape[0], :].astype(o_ref.dtype)


def _mlp_pallas(xt, w1, wslab, bslab, out_rows, tb):
    """xt: (in_dim, B_pad) compute dtype.  Returns (out_rows, B_pad) f32."""
    in_dim, B_pad = xt.shape
    grid = (B_pad // tb,)

    def resident(shape):
        zeros = (0,) * len(shape)
        # Same (whole) block every grid step -> stays in VMEM, no re-DMA.
        return pl.BlockSpec(shape, lambda i: zeros)

    return pl.pallas_call(
        mlp_kernel,
        out_shape=jax.ShapeDtypeStruct((out_rows, B_pad), jnp.float32),
        grid_spec=pltpu.PrefetchScalarGridSpec(
            num_scalar_prefetch=0,
            grid=grid,
            in_specs=[
                pl.BlockSpec((in_dim, tb), lambda i: (0, i)),   # x^T batch tile
                resident(w1.shape),                             # fc1 weight
                resident(wslab.shape),                          # fc2/3/4 weights
                resident(bslab.shape),                          # biases
            ],
            out_specs=pl.BlockSpec((out_rows, tb), lambda i: (0, i)),
        ),
        compiler_params=pltpu.CompilerParams(
            dimension_semantics=("parallel",)),   # batch steps shard across TCs (v7x)
    )(xt, w1, wslab, bslab)


# ----------------------------------------------------------------------------
# Pure-JAX reference (mirrors torch.nn.functional.linear semantics).
# ----------------------------------------------------------------------------
def net_forward_ref(x, p):
    h = jnp.maximum(x @ p["w1"].T + p["b1"].T, 0.0)
    h = jnp.maximum(h @ p["w2"].T + p["b2"].T, 0.0)
    h = jnp.maximum(h @ p["w3"].T + p["b3"].T, 0.0)
    return h @ p["w4"].T + p["b4"].T


# ----------------------------------------------------------------------------
# Public entry point (jitted so layout prep/epilogue fuse into single passes).
# ----------------------------------------------------------------------------
@functools.partial(jax.jit,
                   static_argnames=("tile_b", "compute_dtype",
                                    "min_pallas_batch"))
def net_forward(x, params, *, tile_b=4096, compute_dtype=jnp.bfloat16,
                min_pallas_batch=0):
    """x: (B, 6) float32.  Returns (B, n_jnts) float32, same as Net.forward.

    compute_dtype only affects matmul inputs; accumulation/bias/ReLU are f32.
    min_pallas_batch: batches smaller than this use the fused pure-XLA path
    (recommended ~1024 in production; 0 here so the kernel is always exercised).
    """
    B, in_dim = x.shape
    n_hidden = params["w1"].shape[0]
    n_jnts = params["w4"].shape[0]
    assert n_jnts <= n_hidden, "packing scheme assumes n_jnts <= n_hidden"

    if B < min_pallas_batch:
        return net_forward_ref(x, params)

    cd = compute_dtype

    # --- batch tiling: pad to 128 lanes; >= 2 parallel grid steps when possible.
    B_lane = _ceil_to(B, LANE)
    if B_lane <= LANE:
        tb = B_lane
    else:
        tb = min(_ceil_to(tile_b, LANE), _ceil_to(B_lane // 2, LANE))
    B_pad = _ceil_to(B_lane, tb)
    out_rows = _ceil_to(n_jnts, SUBLANE)

    # --- lane-dense input: pad batch then transpose+cast (fuses under jit).
    xt = jnp.pad(x, ((0, B_pad - B), (0, 0))).T.astype(cd)       # (in_dim, B_pad)

    # --- pack params: 1 small fc1 weight + 1 weight slab + 1 bias slab (a few KB).
    w1 = params["w1"].astype(cd)                                  # (n_hidden, 6)
    wslab = jnp.zeros((3, n_hidden, n_hidden), cd)
    wslab = wslab.at[0].set(params["w2"].astype(cd))
    wslab = wslab.at[1].set(params["w3"].astype(cd))
    wslab = wslab.at[2, :n_jnts, :].set(params["w4"].astype(cd))  # zero-padded rows
    bslab = jnp.zeros((4, n_hidden, 1), jnp.float32)
    bslab = bslab.at[0].set(params["b1"].astype(jnp.float32))
    bslab = bslab.at[1].set(params["b2"].astype(jnp.float32))
    bslab = bslab.at[2].set(params["b3"].astype(jnp.float32))
    bslab = bslab.at[3, :n_jnts, :].set(params["b4"].astype(jnp.float32))

    out_t = _mlp_pallas(xt, w1, wslab, bslab, out_rows, tb)       # (out_rows, B_pad)

    # Padded batch columns / padded output rows are garbage/zero; slice them off
    # (fused under jit).  Never reduce over the padded axis inside the kernel.
    return out_t[:n_jnts, :B].T                                   # (B, n_jnts)


# ----------------------------------------------------------------------------
# Deterministic synthetic params, PyTorch nn.Linear layout (out, in).
# ----------------------------------------------------------------------------
def init_params(key, n_hidden, n_jnts):
    ks = jax.random.split(key, 8)

    def lin(kw, kb, fan_in, fan_out):
        bound = 1.0 / jnp.sqrt(fan_in)
        w = jax.random.uniform(kw, (fan_out, fan_in), jnp.float32, -bound, bound)
        b = jax.random.uniform(kb, (fan_out, 1), jnp.float32, -bound, bound)
        return w, b

    w1, b1 = lin(ks[0], ks[1], 6, n_hidden)
    w2, b2 = lin(ks[2], ks[3], n_hidden, n_hidden)
    w3, b3 = lin(ks[4], ks[5], n_hidden, n_hidden)
    w4, b4 = lin(ks[6], ks[7], n_hidden, n_jnts)
    return {"w1": w1, "b1": b1, "w2": w2, "b2": b2,
            "w3": w3, "b3": b3, "w4": w4, "b4": b4}


if __name__ == "__main__":
    key = jax.random.PRNGKey(0)
    k_x, k_x2, k_p = jax.random.split(key, 3)

    n_hidden = 32   # hidden width
    n_jnts = 6      # cobotta has 6 joints
    params = init_params(k_p, n_hidden, n_jnts)

    # 1) Small batch, f32 compute: single-tile kernel path, tight tolerance.
    B = 16
    x = jax.random.normal(k_x, (B, 6), jnp.float32)
    out = jax.block_until_ready(
        net_forward(x, params, compute_dtype=jnp.float32))
    ref = net_forward_ref(x, params)
    assert out.shape == (B, n_jnts)
    assert jnp.allclose(out, ref, atol=1e-4, rtol=1e-4), "mismatch (f32 path)"

    # 2) Larger ragged batch, bf16 matmul inputs (default): exercises batch
    #    padding and a 2-step parallel grid (both TensorCores on v7x).
    B2 = 1000
    x2 = jax.random.normal(k_x2, (B2, 6), jnp.float32)
    out2 = jax.block_until_ready(net_forward(x2, params))
    ref2 = net_forward_ref(x2, params)
    assert out2.shape == (B2, n_jnts)
    assert jnp.allclose(out2, ref2, atol=5e-2, rtol=5e-2), "mismatch (bf16 path)"

    print("KERNEL_OK")
</pallas_src>

<mosaic_0001>
module attributes {stable_mosaic.version = 11 : i64} {
  func.func @mlp_kernel(%arg0: i32, %arg1: memref<6x128xf32, #tpu.memory_space<vmem>>, %arg2: memref<32x6xf32, #tpu.memory_space<vmem>>, %arg3: memref<3x32x32xf32, #tpu.memory_space<vmem>>, %arg4: memref<4x32x1xf32, #tpu.memory_space<vmem>>, %arg5: memref<8x128xf32, #tpu.memory_space<vmem>>) attributes {dimension_semantics = [#tpu.dimension_semantics<parallel>], iteration_bounds = array<i64: 1>, scalar_prefetch = 0 : i64, scratch_operands = 0 : i64, tpu.core_type = #tpu.core_type<tc>, window_params = [{transform_indices = @transform_0, window_bounds = array<i64: 6, 128>}, {pipeline_mode = #tpu.pipeline_mode<synchronous>, transform_indices = @transform_1, window_bounds = array<i64: 32, 6>}, {pipeline_mode = #tpu.pipeline_mode<synchronous>, transform_indices = @transform_2, window_bounds = array<i64: 3, 32, 32>}, {pipeline_mode = #tpu.pipeline_mode<synchronous>, transform_indices = @transform_3, window_bounds = array<i64: 4, 32, 1>}, {transform_indices = @transform_4, window_bounds = array<i64: 8, 128>}]} {
    %c0 = arith.constant 0 : index
    %c0_0 = arith.constant 0 : index
    %0 = vector.load %arg2[%c0, %c0_0] : memref<32x6xf32, #tpu.memory_space<vmem>>, vector<32x6xf32>
    %c0_1 = arith.constant 0 : index
    %c0_2 = arith.constant 0 : index
    %1 = vector.load %arg1[%c0_1, %c0_2] : memref<6x128xf32, #tpu.memory_space<vmem>>, vector<6x128xf32>
    %cst = arith.constant dense<0.000000e+00> : vector<32x128xf32>
    %2 = tpu.matmul %0, %1, %cst {dimension_numbers = #tpu.dot_dimension_numbers<[1], [0], [0], [1], [0, 0, 1, 1], [], []>} : vector<32x6xf32>, vector<6x128xf32>, vector<32x128xf32> -> vector<32x128xf32>
    %c0_3 = arith.constant 0 : index
    %c0_4 = arith.constant 0 : index
    %c0_5 = arith.constant 0 : index
    %3 = vector.load %arg4[%c0_3, %c0_4, %c0_5] : memref<4x32x1xf32, #tpu.memory_space<vmem>>, vector<1x32x1xf32>
    %4 = vector.shape_cast %3 : vector<1x32x1xf32> to vector<32x1xf32>
    %5 = vector.broadcast %4 : vector<32x1xf32> to vector<32x128xf32>
    %6 = arith.addf %2, %5 : vector<32x128xf32>
    %cst_6 = arith.constant 0.000000e+00 : f32
    %7 = vector.broadcast %cst_6 : f32 to vector<32x128xf32>
    %8 = arith.maximumf %6, %7 : vector<32x128xf32>
    %c0_7 = arith.constant 0 : index
    %c0_8 = arith.constant 0 : index
    %c0_9 = arith.constant 0 : index
    %9 = vector.load %arg3[%c0_7, %c0_8, %c0_9] : memref<3x32x32xf32, #tpu.memory_space<vmem>>, vector<1x32x32xf32>
    %10 = vector.shape_cast %9 : vector<1x32x32xf32> to vector<32x32xf32>
    %cst_10 = arith.constant dense<0.000000e+00> : vector<32x128xf32>
    %11 = tpu.matmul %10, %8, %cst_10 {dimension_numbers = #tpu.dot_dimension_numbers<[1], [0], [0], [1], [0, 0, 1, 1], [], []>} : vector<32x32xf32>, vector<32x128xf32>, vector<32x128xf32> -> vector<32x128xf32>
    %c1 = arith.constant 1 : index
    %c0_11 = arith.constant 0 : index
    %c0_12 = arith.constant 0 : index
    %12 = vector.load %arg4[%c1, %c0_11, %c0_12] : memref<4x32x1xf32, #tpu.memory_space<vmem>>, vector<1x32x1xf32>
    %13 = vector.shape_cast %12 : vector<1x32x1xf32> to vector<32x1xf32>
    %14 = vector.broadcast %13 : vector<32x1xf32> to vector<32x128xf32>
    %15 = arith.addf %11, %14 : vector<32x128xf32>
    %cst_13 = arith.constant 0.000000e+00 : f32
    %16 = vector.broadcast %cst_13 : f32 to vector<32x128xf32>
    %17 = arith.maximumf %15, %16 : vector<32x128xf32>
    %c1_14 = arith.constant 1 : index
    %c0_15 = arith.constant 0 : index
    %c0_16 = arith.constant 0 : index
    %18 = vector.load %arg3[%c1_14, %c0_15, %c0_16] : memref<3x32x32xf32, #tpu.memory_space<vmem>>, vector<1x32x32xf32>
    %19 = vector.shape_cast %18 : vector<1x32x32xf32> to vector<32x32xf32>
    %cst_17 = arith.constant dense<0.000000e+00> : vector<32x128xf32>
    %20 = tpu.matmul %19, %17, %cst_17 {dimension_numbers = #tpu.dot_dimension_numbers<[1], [0], [0], [1], [0, 0, 1, 1], [], []>} : vector<32x32xf32>, vector<32x128xf32>, vector<32x128xf32> -> vector<32x128xf32>
    %c2 = arith.constant 2 : index
    %c0_18 = arith.constant 0 : index
    %c0_19 = arith.constant 0 : index
    %21 = vector.load %arg4[%c2, %c0_18, %c0_19] : memref<4x32x1xf32, #tpu.memory_space<vmem>>, vector<1x32x1xf32>
    %22 = vector.shape_cast %21 : vector<1x32x1xf32> to vector<32x1xf32>
    %23 = vector.broadcast %22 : vector<32x1xf32> to vector<32x128xf32>
    %24 = arith.addf %20, %23 : vector<32x128xf32>
    %cst_20 = arith.constant 0.000000e+00 : f32
    %25 = vector.broadcast %cst_20 : f32 to vector<32x128xf32>
    %26 = arith.maximumf %24, %25 : vector<32x128xf32>
    %c2_21 = arith.constant 2 : index
    %c0_22 = arith.constant 0 : index
    %c0_23 = arith.constant 0 : index
    %27 = vector.load %arg3[%c2_21, %c0_22, %c0_23] : memref<3x32x32xf32, #tpu.memory_space<vmem>>, vector<1x32x32xf32>
    %28 = vector.shape_cast %27 : vector<1x32x32xf32> to vector<32x32xf32>
    %cst_24 = arith.constant dense<0.000000e+00> : vector<32x128xf32>
    %29 = tpu.matmul %28, %26, %cst_24 {dimension_numbers = #tpu.dot_dimension_numbers<[1], [0], [0], [1], [0, 0, 1, 1], [], []>} : vector<32x32xf32>, vector<32x128xf32>, vector<32x128xf32> -> vector<32x128xf32>
    %c3 = arith.constant 3 : index
    %c0_25 = arith.constant 0 : index
    %c0_26 = arith.constant 0 : index
    %30 = vector.load %arg4[%c3, %c0_25, %c0_26] : memref<4x32x1xf32, #tpu.memory_space<vmem>>, vector<1x32x1xf32>
    %31 = vector.shape_cast %30 : vector<1x32x1xf32> to vector<32x1xf32>
    %32 = vector.broadcast %31 : vector<32x1xf32> to vector<32x128xf32>
    %33 = arith.addf %29, %32 : vector<32x128xf32>
    %34 = vector.extract_strided_slice %33 {offsets = [0, 0], sizes = [8, 128], strides = [1, 1]} : vector<32x128xf32> to vector<8x128xf32>
    %c0_27 = arith.constant 0 : index
    %c0_28 = arith.constant 0 : index
    %35 = vector.load %arg5[%c0_27, %c0_28] : memref<8x128xf32, #tpu.memory_space<vmem>>, vector<8x128xf32>
    tpu.vector_store %arg5[%c0_27, %c0_28], %34 {strides = array<i32>} : memref<8x128xf32, #tpu.memory_space<vmem>>, vector<8x128xf32>,
    return
  }
  func.func @transform_0(%arg0: i32) -> (i32, i32) {
    %c0_i32 = arith.constant 0 : i32
    %c0_i32_0 = arith.constant 0 : i32
    return %c0_i32, %arg0 : i32, i32
  }
  func.func @transform_1(%arg0: i32) -> (i32, i32) {
    %c0_i32 = arith.constant 0 : i32
    %c0_i32_0 = arith.constant 0 : i32
    %c0_i32_1 = arith.constant 0 : i32
    return %c0_i32, %c0_i32_0 : i32, i32
  }
  func.func @transform_2(%arg0: i32) -> (i32, i32, i32) {
    %c0_i32 = arith.constant 0 : i32
    %c0_i32_0 = arith.constant 0 : i32
    %c0_i32_1 = arith.constant 0 : i32
    %c0_i32_2 = arith.constant 0 : i32
    return %c0_i32, %c0_i32_0, %c0_i32_1 : i32, i32, i32
  }
  func.func @transform_3(%arg0: i32) -> (i32, i32, i32) {
    %c0_i32 = arith.constant 0 : i32
    %c0_i32_0 = arith.constant 0 : i32
    %c0_i32_1 = arith.constant 0 : i32
    %c0_i32_2 = arith.constant 0 : i32
    return %c0_i32, %c0_i32_0, %c0_i32_1 : i32, i32, i32
  }
  func.func @transform_4(%arg0: i32) -> (i32, i32) {
    %c0_i32 = arith.constant 0 : i32
    %c0_i32_0 = arith.constant 0 : i32
    return %c0_i32, %arg0 : i32, i32
  }
}

</mosaic_0001>

<bundles_post_ra>
// kernel: net_forward.1
= control target key start
LH: loop header
LB: loop body
LE: loop exit
PB: predicated region body
PF: predicated region fallthrough
CT: control target
= control target key end

     0   :  { %vm59_vm0 = vcmask 1045504   ;;  %vm46_vm1 = vcmask 48128   ;;  %v667_v3 = vmov 0   ;;  %vm181_vm2 = vcmask 261120   ;;  %s802_s0 = inlined_call_operand.vmem [shape: f32[6,128], index: 0, kind: input, shape index: {}]   ;;  %s803_s1 = inlined_call_operand.vmem [shape: f32[32,6], index: 1, kind: input, shape index: {}]   ;;  %s804_s3 = inlined_call_operand.vmem [shape: f32[4,32,1], index: 3, kind: input, shape index: {}]   ;;  %s805_s2 = inlined_call_operand.vmem [shape: f32[3,32,32], index: 2, kind: input, shape index: {}]   ;;  %s806_s4 = inlined_call_operand.vmem [shape: f32[8,128], index: 4, kind: output, shape index: {}]  }
   0x1   :  { %v21_v0 = vld [vmem:[%s802_s0] sm:$0x3f]  ;;  %v18_v2 = vld [vmem:[%s803_s1 + $0x8] sm:$0xff]  ;;  %665 = vset.pattern.permute.xlu0 %v667_v3  ;;  %666 = vset.pattern.permute.xlu1 %v667_v3  ;;  %v19_v4 = vld [vmem:[%s803_s1 + $0x10] sm:$0xff] }
   0x2   :  { %v17_v1 = vld [vmem:[%s803_s1] sm:$0xff]  ;;  %606 = vmatprep.subr.msk.mxu0 %vm59_vm0, %v21_v0  ;;  %v25_v5 = vld [vmem:[%s804_s3 + $0x18] sm:$0xff]  ;;  %v23_v6 = vld [vmem:[%s804_s3 + $0x8] sm:$0xff] }
   0x3   :  { %608 = vmatprep.mubr.msk.f32.mxu0 %vm46_vm1, %v17_v1  ;;  %607 = vmatpush3.msk.msra.mxu0 %vm59_vm0, %v21_v0  ;;  %v24_v7 = vld [vmem:[%s804_s3 + $0x10] sm:$0xff]  ;;  %v20_v8 = vld [vmem:[%s803_s1 + $0x18] sm:$0xff]  ;;  %v22_v9 = vld [vmem:[%s804_s3] sm:$0xff] }
   0x4   :  { %43 = vperm.xlu0 %665, %v25_v5   ;;  %609 = vmatmul.mubr.msk.f32.vlgmr.msra.gmra.mxu0 %vm46_vm1, %v18_v2  ;;  %v548_v10 = vld [vmem:[%s804_s3 + $0x38] sm:$0xff]  ;;  %v547_v11 = vld [vmem:[%s804_s3 + $0x30] sm:$0xff]  ;;  %v546_v12 = vld [vmem:[%s804_s3 + $0x28] sm:$0xff] }
   0x5   :  { %33 = vperm.xlu1 %666, %v23_v6   ;;  %611 = vmatprep.mubr.msk.f32.mxu0 %vm46_vm1, %v19_v4  ;;  %v545_v13 = vld [vmem:[%s804_s3 + $0x20] sm:$0xff]  ;;  %v560_v14 = vld [vmem:[%s804_s3 + $0x58] sm:$0xff]  ;;  %v559_v15 = vld [vmem:[%s804_s3 + $0x50] sm:$0xff] }
   0x6   :  { %v558_v16 = vld [vmem:[%s804_s3 + $0x48] sm:$0xff]  ;;  %v557_v17 = vld [vmem:[%s804_s3 + $0x40] sm:$0xff]  ;;  %v154_v37 = vld [vmem:[%s805_s2 + $0x10] sm:$0xff] }
   0x7   :  { %v569_v18 = vld [vmem:[%s804_s3 + $0x60] sm:$0xff]  ;;  %v153_v36 = vld [vmem:[%s805_s2 + $0x8] sm:$0xff]  ;;  %v155_v38 = vld [vmem:[%s805_s2 + $0x18] sm:$0xff] }
   0x8   :  { %38 = vperm.xlu0 %665, %v24_v7   ;;  %612 = vmatmul.mubr.msk.f32.gmra.mxu0 %vm46_vm1, %v20_v8  ;;  %v152_v19 = vld [vmem:[%s805_s2] sm:$0xff]  ;;  %v554_v56 = vld [vmem:[%s805_s2 + $0x28] sm:$0xff]  ;;  %v555_v57 = vld [vmem:[%s805_s2 + $0x30] sm:$0xff] }
   0x9   :  { %28 = vperm.xlu1 %666, %v22_v9   ;;  %622 = vmatprep.mubr.msk.f32.mxu1 %vm181_vm2, %v152_v19  ;;  %v553_v39 = vld [vmem:[%s805_s2 + $0x20] sm:$0xff]  ;;  %v556_v58 = vld [vmem:[%s805_s2 + $0x38] sm:$0xff]  ;;  %v567_v60 = vld [vmem:[%s805_s2 + $0x50] sm:$0xff] }
   0xa   :  { %636 = vmatprep.mubr.msk.f32.mxu0 %vm181_vm2, %v553_v39  ;;  %v565_v59 = vld [vmem:[%s805_s2 + $0x40] sm:$0xff] }
   0xc   :  { %178 = vperm.xlu0 %665, %v548_v10  }
   0xd   :  { %173 = vperm.xlu1 %666, %v547_v11  }
  0x10   :  { %168 = vperm.xlu0 %665, %v546_v12  }
  0x11   :  { %163 = vperm.xlu1 %666, %v545_v13   ;;  %v566_v13 = vld [vmem:[%s805_s2 + $0x48] sm:$0xff] }
  0x14   :  { %310 = vperm.xlu0 %665, %v560_v14   ;;  %v568_v14 = vld [vmem:[%s805_s2 + $0x58] sm:$0xff] }
  0x15   :  { %305 = vperm.xlu1 %666, %v559_v15  }
  0x18   :  { %300 = vperm.xlu0 %665, %v558_v16  }
  0x19   :  { %295 = vperm.xlu1 %666, %v557_v17  }
  0x1c   :  { %426 = vperm.xlu0 %665, %v569_v18  }
  0x7f   :  { %v44_v20 = vpop.permute.xlu0 %43 }
  0x80   :  { %v34_v22 = vpop.permute.xlu1 %33 }
  0x83   :  { %v39_v26 = vpop.permute.xlu0 %38 }
  0x84   :  { %v29_v31 = vpop.permute.xlu1 %28 }
  0x87   :  { %v179_v40 = vpop.permute.xlu0 %178 }
  0x88   :  { %v174_v42 = vpop.permute.xlu1 %173 }
  0x8b   :  { %v169_v46 = vpop.permute.xlu0 %168 }
  0x8c   :  { %v164_v51 = vpop.permute.xlu1 %163 }
  0x8f   :  { %v311_v61 = vpop.permute.xlu0 %310 }
  0x90   :  { %v306_v63 = vpop.permute.xlu1 %305 }
  0x93   :  { %v301_v3 = vpop.permute.xlu0 %300 }
  0x94   :  { %v296_v8 = vpop.permute.xlu1 %295 }
  0x97   :  { %v427_v17 = vpop.permute.xlu0 %426 }
  0xc4   :  { %v610_v21 = vpop.f32.mrf.mxu0 }
  0xc5   :  { %v135_v28 = vadd.f32 %v610_v21, %v34_v22 }
  0xc6   :  { %v129_v23 = vpop.f32.mrf.mxu0 }
  0xc7   :  { %v130_v32 = vadd.f32 %v129_v23, %v29_v31  ;;  %v149_v34 = vmax.f32 %v135_v28, 0.0 }
  0xc8   :  { %v613_v24 = vpop.f32.mrf.mxu0 }
  0xc9   :  { %v145_v25 = vadd.f32 %v613_v24, %v44_v20  ;;  %v148_v35 = vmax.f32 %v130_v32, 0.0 }
  0xca   :  { %v139_v27 = vpop.f32.mrf.mxu0 }
  0xcb   :  { %v151_v29 = vmax.f32 %v145_v25, 0.0  ;;  %v140_v30 = vadd.f32 %v139_v27, %v39_v26 }
  0xcd   :  { %v150_v33 = vmax.f32 %v140_v30, 0.0  ;;  %614 = vmatprep.subr.mxu1 %v151_v29 }
  0xce   :  { %615 = vmatpush3.msra.mxu1 %v151_v29 }
  0xcf   :  { %616 = vmatprep.subr.mxu1 %v150_v33 }
  0xd0   :  { %617 = vmatpush3.msra.mxu1 %v150_v33 }
  0xd1   :  { %618 = vmatprep.subr.mxu1 %v149_v34 }
  0xd2   :  { %619 = vmatpush3.msra.mxu1 %v149_v34 }
  0xd3   :  { %620 = vmatprep.subr.mxu1 %v148_v35 }
  0xd4   :  { %621 = vmatpush3.msra.mxu1 %v148_v35 }
  0xd5   :  { %623 = vmatmul.mubr.msk.f32.vlgmr.msra.gmra.mxu1 %vm181_vm2, %v153_v36 }
  0xd6   :  { %625 = vmatprep.mubr.msk.f32.mxu1 %vm181_vm2, %v154_v37 }
  0xd9   :  { %626 = vmatmul.mubr.msk.f32.gmra.mxu1 %vm181_vm2, %v155_v38 }
  0xda   :  { %653 = vmatprep.mubr.msk.f32.mxu1 %vm181_vm2, %v567_v60 }
 0x195   :  { %v624_v41 = vpop.f32.mrf.mxu1 }
 0x196   :  { %v266_v48 = vadd.f32 %v624_v41, %v169_v46 }
 0x197   :  { %v260_v43 = vpop.f32.mrf.mxu1 }
 0x198   :  { %v261_v52 = vadd.f32 %v260_v43, %v164_v51  ;;  %v280_v54 = vmax.f32 %v266_v48, 0.0 }
 0x199   :  { %v627_v44 = vpop.f32.mrf.mxu1 }
 0x19a   :  { %v276_v45 = vadd.f32 %v627_v44, %v179_v40  ;;  %v279_v55 = vmax.f32 %v261_v52, 0.0 }
 0x19b   :  { %v270_v47 = vpop.f32.mrf.mxu1 }
 0x19c   :  { %v282_v49 = vmax.f32 %v276_v45, 0.0  ;;  %v271_v50 = vadd.f32 %v270_v47, %v174_v42 }
 0x19e   :  { %v281_v53 = vmax.f32 %v271_v50, 0.0  ;;  %628 = vmatprep.subr.mxu0 %v282_v49 }
 0x19f   :  { %629 = vmatpush3.msra.mxu0 %v282_v49 }
 0x1a0   :  { %630 = vmatprep.subr.mxu0 %v281_v53 }
 0x1a1   :  { %631 = vmatpush3.msra.mxu0 %v281_v53 }
 0x1a2   :  { %632 = vmatprep.subr.mxu0 %v280_v54 }
 0x1a3   :  { %633 = vmatpush3.msra.mxu0 %v280_v54 }
 0x1a4   :  { %634 = vmatprep.subr.mxu0 %v279_v55 }
 0x1a5   :  { %635 = vmatpush3.msra.mxu0 %v279_v55 }
 0x1a6   :  { %637 = vmatmul.mubr.msk.f32.vlgmr.msra.gmra.mxu0 %vm181_vm2, %v554_v56 }
 0x1a7   :  { %639 = vmatprep.mubr.msk.f32.mxu0 %vm181_vm2, %v555_v57 }
 0x1aa   :  { %640 = vmatmul.mubr.msk.f32.gmra.mxu0 %vm181_vm2, %v556_v58 }
 0x1ab   :  { %650 = vmatprep.mubr.msk.f32.mxu0 %vm181_vm2, %v565_v59 }
 0x266   :  { %v638_v62 = vpop.f32.mrf.mxu0 }
 0x267   :  { %v397_v5 = vadd.f32 %v638_v62, %v301_v3 }
 0x268   :  { %v391_v0 = vpop.f32.mrf.mxu0 }
 0x269   :  { %v392_v9 = vadd.f32 %v391_v0, %v296_v8  ;;  %v411_v11 = vmax.f32 %v397_v5, 0.0 }
 0x26a   :  { %v641_v1 = vpop.f32.mrf.mxu0 }
 0x26b   :  { %v407_v2 = vadd.f32 %v641_v1, %v311_v61  ;;  %v410_v12 = vmax.f32 %v392_v9, 0.0 }
 0x26c   :  { %v401_v4 = vpop.f32.mrf.mxu0 }
 0x26d   :  { %v413_v6 = vmax.f32 %v407_v2, 0.0  ;;  %v402_v7 = vadd.f32 %v401_v4, %v306_v63 }
 0x26f   :  { %v412_v10 = vmax.f32 %v402_v7, 0.0  ;;  %642 = vmatprep.subr.mxu0 %v413_v6  ;;  %656 = vmatprep.subr.mxu1 %v413_v6 }
 0x270   :  { %643 = vmatpush3.msra.mxu0 %v413_v6  ;;  %660 = vmatpush3.msra.mxu1 %v413_v6 }
 0x271   :  { %644 = vmatprep.subr.mxu0 %v412_v10  ;;  %657 = vmatprep.subr.mxu1 %v412_v10 }
 0x272   :  { %645 = vmatpush3.msra.mxu0 %v412_v10  ;;  %661 = vmatpush3.msra.mxu1 %v412_v10 }
 0x273   :  { %646 = vmatprep.subr.mxu0 %v411_v11  ;;  %658 = vmatprep.subr.mxu1 %v411_v11 }
 0x274   :  { %647 = vmatpush3.msra.mxu0 %v411_v11  ;;  %662 = vmatpush3.msra.mxu1 %v411_v11 }
 0x275   :  { %648 = vmatprep.subr.mxu0 %v410_v12  ;;  %659 = vmatprep.subr.mxu1 %v410_v12 }
 0x276   :  { %649 = vmatpush3.msra.mxu0 %v410_v12  ;;  %663 = vmatpush3.msra.mxu1 %v410_v12 }
 0x277   :  { %651 = vmatmul.mubr.msk.f32.vlgmr.msra.gmra.mxu0 %vm181_vm2, %v566_v13  ;;  %654 = vmatmul.mubr.msk.f32.vlgmr.msra.gmra.mxu1 %vm181_vm2, %v568_v14 }
 0x337   :  { %v652_v15 = vpop.f32.mrf.mxu0  ;;  %v655_v16 = vpop.f32.mrf.mxu1 }
 0x339   :  { %v519_v18 = vpop.f32.mrf.mxu0  ;;  %v528_v19 = vpop.f32.mrf.mxu1 }
 0x33a   :  { %v520_v20 = vadd.f32 %v519_v18, %v427_v17 }
 0x33c   :  { %535 = vst [vmem:[%s806_s4] sm:$0xff] %v520_v20 }

</bundles_post_ra>
